<compile_context>
chip_gen: v7x
topology: tpu7x:2x2x1
jax: 0.10.0
libtpu: 0.0.40
codegen_flags: <defaults>
</compile_context>

<pallas_src>
import functools

import jax
import jax.numpy as jnp
from jax.experimental import pallas as pl
from jax.experimental.pallas import tpu as pltpu

# TODO(synk): the pretrained BERT/LED encoder (AutoModel.from_pretrained) has no
# in-script equivalent; its output hidden states are synthesized as kernel input.


def _round_up(x, m):
    return ((x + m - 1) // m) * m


def _cdiv(a, b):
    return -(-a // b)


def _choose_tile_m(batch, tile_m):
    """Rows of the batch handled per grid step.

    Targets (per perf review):
      * TM as large as possible        -> amortize ~0.35 us fixed per-step overhead,
      * TM a multiple of 16            -> clean bf16 sublane packing (no relayout),
      * >= 2 (even #) grid steps once batch >= 32 -> both v7x TensorCores get work,
      * never shrink tiles for odd batch sizes: tail is handled by cdiv + Pallas'
        masked out-of-bounds stores, not by a divisibility assert.
    """
    tile_m = max(16, (tile_m // 16) * 16)
    if batch < 32:
        # Tiny batch: a single block covering the whole batch dim (full-dim block
        # shapes are exempt from the (8,128)/16-sublane alignment rule).
        return batch
    tm = min(tile_m, (batch // 16) * 16)
    nb = _cdiv(batch, tm)
    nb = max(2, nb)            # give v7x's second TensorCore something to do
    if nb % 2:
        nb += 1                # even step count -> balanced split across 2 TCs
    # Shrink TM back to the smallest 16-multiple that still yields nb steps, so
    # the tail block wastes as few padded rows as possible.
    return min(_round_up(_cdiv(batch, nb), 16), (batch // 16) * 16)


def _head_kernel(x_ref, w1_ref, b1_ref, w2_ref, b2_ref, lbl_ref,
                 pred_ref, nll_ref, *, num_labels):
    """Classification head + CE + argmax for one batch tile, all in VMEM.

    x_ref:    (TM, H)   bf16  CLS-token representations (strided DMA of seq=0 rows)
    w1_ref:   (H, H)    bf16  dense weight (in, out)        -- resident across grid
    b1_ref:   (1, H)    f32   dense bias
    w2_ref:   (H, Lp)   bf16  out_proj weight, L padded to 128 lanes
    b2_ref:   (1, Lp)   f32   out_proj bias (zero in padded lanes)
    lbl_ref:  (TM, 1)   i32   labels
    pred_ref: (TM, 1)   i32   argmax output
    nll_ref:  (TM, 1)   f32   per-row negative log-likelihood output
    """
    # dense -> tanh (dropout is identity at inference); bf16 MXU, f32 accumulate,
    # f32 VPU/EUP elementwise (v5e has no bf16 VPU/EUP path).
    h = jnp.dot(x_ref[...], w1_ref[...], preferred_element_type=jnp.float32)
    h = jnp.tanh(h + b1_ref[...])

    # out_proj (lane-dense Lp = 128 columns)
    logits = jnp.dot(h.astype(w2_ref.dtype), w2_ref[...],
                     preferred_element_type=jnp.float32) + b2_ref[...]   # (TM, Lp) f32

    tm, lp = logits.shape
    lane = jax.lax.broadcasted_iota(jnp.int32, (tm, lp), 1)
    valid = lane < num_labels
    logits = jnp.where(valid, logits, jnp.float32(-1e30))   # mask padded lanes

    # argmax over valid lanes (first-max tie-break, matches torch.argmax).
    # m and logits are the same f32 values, so the equality compare is exact.
    m = jnp.max(logits, axis=-1, keepdims=True)                          # (TM, 1)
    pred = jnp.min(jnp.where(logits == m, lane, lp), axis=-1, keepdims=True)
    pred_ref[...] = pred.astype(jnp.int32)

    # numerically-stable log-softmax + per-row NLL (padded lanes exp() -> 0)
    z = logits - m
    lse = jnp.log(jnp.sum(jnp.exp(z), axis=-1, keepdims=True))           # (TM, 1)
    tgt = jnp.sum(jnp.where(lane == lbl_ref[...], z, 0.0),
                  axis=-1, keepdims=True)                                # z[label]
    nll_ref[...] = lse - tgt


def sentence_classifier_forward(hidden_states, params, labels, num_labels,
                                *, tile_m=1024):
    """hidden_states: (B, S, H) encoder output (bf16). Returns (pred, loss)."""
    B, S, H = hidden_states.shape
    assert H % 128 == 0, "hidden size must be a multiple of 128 lanes"
    Lp = params["w2"].shape[1]

    # View (B, S, H) as (B, S*H): free bitcast; the x BlockSpec then windows
    # only the first H columns of each row == the CLS token rows.
    hs2d = hidden_states.reshape(B, S * H)
    lbl2d = labels.reshape(B, 1).astype(jnp.int32)

    TM = _choose_tile_m(B, tile_m)
    # cdiv grid: the last block may overrun B; those rows load garbage, their
    # per-row results are dropped by Pallas' masked OOB store, and the kernel
    # math is row-independent, so correctness is unaffected.
    nb = _cdiv(B, TM)

    kernel = functools.partial(_head_kernel, num_labels=num_labels)
    pred2d, nll = pl.pallas_call(
        kernel,
        grid=(nb,),
        in_specs=[
            # CLS rows only: strided DMA of the first H columns of each S*H row.
            pl.BlockSpec((TM, H), lambda i: (i, 0)),
            # Weights / biases: constant block index -> DMA'd once, resident in
            # VMEM for the whole grid (a couple MiB; far below the scoped limit).
            pl.BlockSpec((H, H), lambda i: (0, 0)),       # w1
            pl.BlockSpec((1, H), lambda i: (0, 0)),       # b1
            pl.BlockSpec((H, Lp), lambda i: (0, 0)),      # w2 (L padded to 128)
            pl.BlockSpec((1, Lp), lambda i: (0, 0)),      # b2
            pl.BlockSpec((TM, 1), lambda i: (i, 0)),      # labels
        ],
        out_specs=(
            pl.BlockSpec((TM, 1), lambda i: (i, 0)),      # pred
            pl.BlockSpec((TM, 1), lambda i: (i, 0)),      # per-row NLL
        ),
        out_shape=(
            jax.ShapeDtypeStruct((B, 1), jnp.int32),
            jax.ShapeDtypeStruct((B, 1), jnp.float32),
        ),
        compiler_params=pltpu.CompilerParams(
            dimension_semantics=("parallel",)),           # batch blocks -> megacore
    )(hs2d, params["w1"], params["b1"], params["w2"], params["b2"], lbl2d)

    pred = pred2d[:, 0]
    loss = jnp.mean(nll)          # tiny (B,) reduce; keeps the batch axis parallel-safe
    return pred, loss


def init_params(key, hidden_size, label_size):
    """nn.Linear-style init U(-1/sqrt(fan_in), 1/sqrt(fan_in)); bf16 weights,
    f32 biases; out_proj columns zero-padded to a multiple of 128 lanes."""
    k1, k2, k3, k4 = jax.random.split(key, 4)
    bound = hidden_size ** -0.5
    lp = _round_up(label_size, 128)
    w1 = jax.random.uniform(k1, (hidden_size, hidden_size), jnp.float32,
                            -bound, bound).astype(jnp.bfloat16)
    b1 = jax.random.uniform(k2, (1, hidden_size), jnp.float32, -bound, bound)
    w2 = jax.random.uniform(k3, (hidden_size, label_size), jnp.float32,
                            -bound, bound).astype(jnp.bfloat16)
    b2 = jax.random.uniform(k4, (1, label_size), jnp.float32, -bound, bound)
    w2 = jnp.pad(w2, ((0, 0), (0, lp - label_size)))
    b2 = jnp.pad(b2, ((0, 0), (0, lp - label_size)))
    return {"w1": w1, "b1": b1, "w2": w2, "b2": b2}


def reference_forward(hidden_states, params, labels, num_labels):
    """Pure-JAX reference with the same precision recipe (bf16 matmul, f32 acc)."""
    x = hidden_states[:, 0, :]
    h = jnp.dot(x, params["w1"], preferred_element_type=jnp.float32) + params["b1"]
    h = jnp.tanh(h)
    logits = jnp.dot(h.astype(jnp.bfloat16), params["w2"],
                     preferred_element_type=jnp.float32) + params["b2"]
    logits = logits[:, :num_labels]
    logp = jax.nn.log_softmax(logits, axis=-1)
    loss = -jnp.mean(jnp.take_along_axis(logp, labels[:, None], axis=-1))
    return jnp.argmax(logits, axis=-1), loss


if __name__ == "__main__":
    # batch=32 exercises 16-row bf16 tiles and the 2-step "parallel" grid.
    B, S, H, L = 32, 8, 128, 3   # batch, seq_len, bert_dim (lane-aligned), label_size

    key = jax.random.PRNGKey(0)
    k_hs, k_lbl, k_par = jax.random.split(key, 3)

    hidden_states = jax.random.normal(k_hs, (B, S, H), dtype=jnp.bfloat16)
    labels = jax.random.randint(k_lbl, (B,), 0, L, dtype=jnp.int32)
    params = init_params(k_par, H, L)

    pred, loss = sentence_classifier_forward(hidden_states, params, labels, L)
    jax.block_until_ready((pred, loss))

    ref_pred, ref_loss = reference_forward(hidden_states, params, labels, L)
    assert jnp.allclose(loss, ref_loss, atol=1e-4, rtol=1e-4), (loss, ref_loss)
    assert (pred == ref_pred).all(), (pred, ref_pred)

    pred_out = pred.tolist()   # mirrors pred.detach().numpy().tolist()
    print("KERNEL_OK")
</pallas_src>

<mosaic_0001>
module attributes {stable_mosaic.version = 11 : i64} {
  func.func @_head_kernel(%arg0: i32, %arg1: memref<16x128xbf16, #tpu.memory_space<vmem>>, %arg2: memref<128x128xbf16, #tpu.memory_space<vmem>>, %arg3: memref<1x128xf32, #tpu.memory_space<vmem>>, %arg4: memref<128x128xbf16, #tpu.memory_space<vmem>>, %arg5: memref<1x128xf32, #tpu.memory_space<vmem>>, %arg6: memref<16x1xi32, #tpu.memory_space<vmem>>, %arg7: memref<16x1xi32, #tpu.memory_space<vmem>>, %arg8: memref<16x1xf32, #tpu.memory_space<vmem>>) attributes {dimension_semantics = [#tpu.dimension_semantics<parallel>], iteration_bounds = array<i64: 2>, scalar_prefetch = 0 : i64, scratch_operands = 0 : i64, tpu.core_type = #tpu.core_type<tc>, window_params = [{transform_indices = @transform_0, window_bounds = array<i64: 16, 128>}, {pipeline_mode = #tpu.pipeline_mode<synchronous>, transform_indices = @transform_1, window_bounds = array<i64: 128, 128>}, {pipeline_mode = #tpu.pipeline_mode<synchronous>, transform_indices = @transform_2, window_bounds = array<i64: 1, 128>}, {pipeline_mode = #tpu.pipeline_mode<synchronous>, transform_indices = @transform_3, window_bounds = array<i64: 128, 128>}, {pipeline_mode = #tpu.pipeline_mode<synchronous>, transform_indices = @transform_4, window_bounds = array<i64: 1, 128>}, {transform_indices = @transform_5, window_bounds = array<i64: 16, 1>}, {transform_indices = @transform_6, window_bounds = array<i64: 16, 1>}, {transform_indices = @transform_7, window_bounds = array<i64: 16, 1>}]} {
    %c0 = arith.constant 0 : index
    %c0_0 = arith.constant 0 : index
    %0 = vector.load %arg1[%c0, %c0_0] : memref<16x128xbf16, #tpu.memory_space<vmem>>, vector<16x128xbf16>
    %c0_1 = arith.constant 0 : index
    %c0_2 = arith.constant 0 : index
    %1 = vector.load %arg2[%c0_1, %c0_2] : memref<128x128xbf16, #tpu.memory_space<vmem>>, vector<128x128xbf16>
    %cst = arith.constant dense<0.000000e+00> : vector<16x128xf32>
    %2 = tpu.matmul %0, %1, %cst {dimension_numbers = #tpu.dot_dimension_numbers<[1], [0], [0], [1], [0, 0, 1, 1], [], []>} : vector<16x128xbf16>, vector<128x128xbf16>, vector<16x128xf32> -> vector<16x128xf32>
    %c0_3 = arith.constant 0 : index
    %c0_4 = arith.constant 0 : index
    %3 = vector.load %arg3[%c0_3, %c0_4] : memref<1x128xf32, #tpu.memory_space<vmem>>, vector<1x128xf32>
    %4 = vector.broadcast %3 : vector<1x128xf32> to vector<16x128xf32>
    %5 = arith.addf %2, %4 : vector<16x128xf32>
    %6 = math.tanh %5 : vector<16x128xf32>
    %7 = arith.truncf %6 : vector<16x128xf32> to vector<16x128xbf16>
    %c0_5 = arith.constant 0 : index
    %c0_6 = arith.constant 0 : index
    %8 = vector.load %arg4[%c0_5, %c0_6] : memref<128x128xbf16, #tpu.memory_space<vmem>>, vector<128x128xbf16>
    %cst_7 = arith.constant dense<0.000000e+00> : vector<16x128xf32>
    %9 = tpu.matmul %7, %8, %cst_7 {dimension_numbers = #tpu.dot_dimension_numbers<[1], [0], [0], [1], [0, 0, 1, 1], [], []>} : vector<16x128xbf16>, vector<128x128xbf16>, vector<16x128xf32> -> vector<16x128xf32>
    %c0_8 = arith.constant 0 : index
    %c0_9 = arith.constant 0 : index
    %10 = vector.load %arg5[%c0_8, %c0_9] : memref<1x128xf32, #tpu.memory_space<vmem>>, vector<1x128xf32>
    %11 = vector.broadcast %10 : vector<1x128xf32> to vector<16x128xf32>
    %12 = arith.addf %9, %11 : vector<16x128xf32>
    %13 = tpu.iota {dimensions = array<i32: 1>} : vector<16x128xi32>
    %c3_i32 = arith.constant 3 : i32
    %14 = vector.broadcast %c3_i32 : i32 to vector<16x128xi32>
    %15 = arith.cmpi slt, %13, %14 : vector<16x128xi32>
    %cst_10 = arith.constant -1.000000e+30 : f32
    %16 = vector.broadcast %cst_10 : f32 to vector<16x128xf32>
    %17 = arith.select %15, %12, %16 : vector<16x128xi1>, vector<16x128xf32>
    %cst_11 = arith.constant dense<0xFF800000> : vector<16xf32>
    %18 = vector.multi_reduction <maximumf>, %17, %cst_11 [1] : vector<16x128xf32> to vector<16xf32>
    %19 = vector.shape_cast %18 : vector<16xf32> to vector<16x1xf32>
    %20 = vector.broadcast %19 : vector<16x1xf32> to vector<16x128xf32>
    %21 = arith.cmpf oeq, %17, %20 : vector<16x128xf32>
    %c128_i32 = arith.constant 128 : i32
    %22 = vector.broadcast %c128_i32 : i32 to vector<16x128xi32>
    %23 = arith.select %21, %13, %22 : vector<16x128xi1>, vector<16x128xi32>
    %cst_12 = arith.constant dense<2147483647> : vector<16xi32>
    %24 = vector.multi_reduction <minsi>, %23, %cst_12 [1] : vector<16x128xi32> to vector<16xi32>
    %25 = vector.shape_cast %24 : vector<16xi32> to vector<16x1xi32>
    %c0_13 = arith.constant 0 : index
    %c0_14 = arith.constant 0 : index
    %26 = vector.load %arg7[%c0_13, %c0_14] : memref<16x1xi32, #tpu.memory_space<vmem>>, vector<16x1xi32>
    tpu.vector_store %arg7[%c0_13, %c0_14], %25 {strides = array<i32>} : memref<16x1xi32, #tpu.memory_space<vmem>>, vector<16x1xi32>,
    %27 = vector.broadcast %19 : vector<16x1xf32> to vector<16x128xf32>
    %28 = arith.subf %17, %27 : vector<16x128xf32>
    %29 = math.exp %28 : vector<16x128xf32>
    %cst_15 = arith.constant dense<0.000000e+00> : vector<16xf32>
    %30 = vector.multi_reduction <add>, %29, %cst_15 [1] : vector<16x128xf32> to vector<16xf32>
    %31 = vector.shape_cast %30 : vector<16xf32> to vector<16x1xf32>
    %32 = math.log %31 : vector<16x1xf32>
    %c0_16 = arith.constant 0 : index
    %c0_17 = arith.constant 0 : index
    %33 = vector.load %arg6[%c0_16, %c0_17] : memref<16x1xi32, #tpu.memory_space<vmem>>, vector<16x1xi32>
    %34 = vector.broadcast %33 : vector<16x1xi32> to vector<16x128xi32>
    %35 = arith.cmpi eq, %13, %34 : vector<16x128xi32>
    %cst_18 = arith.constant 0.000000e+00 : f32
    %36 = vector.broadcast %cst_18 : f32 to vector<16x128xf32>
    %37 = arith.select %35, %28, %36 : vector<16x128xi1>, vector<16x128xf32>
    %cst_19 = arith.constant dense<0.000000e+00> : vector<16xf32>
    %38 = vector.multi_reduction <add>, %37, %cst_19 [1] : vector<16x128xf32> to vector<16xf32>
    %39 = vector.shape_cast %38 : vector<16xf32> to vector<16x1xf32>
    %40 = arith.subf %32, %39 : vector<16x1xf32>
    %c0_20 = arith.constant 0 : index
    %c0_21 = arith.constant 0 : index
    %41 = vector.load %arg8[%c0_20, %c0_21] : memref<16x1xf32, #tpu.memory_space<vmem>>, vector<16x1xf32>
    tpu.vector_store %arg8[%c0_20, %c0_21], %40 {strides = array<i32>} : memref<16x1xf32, #tpu.memory_space<vmem>>, vector<16x1xf32>,
    return
  }
  func.func @transform_0(%arg0: i32) -> (i32, i32) {
    %c0_i32 = arith.constant 0 : i32
    %c0_i32_0 = arith.constant 0 : i32
    return %arg0, %c0_i32 : i32, i32
  }
  func.func @transform_1(%arg0: i32) -> (i32, i32) {
    %c0_i32 = arith.constant 0 : i32
    %c0_i32_0 = arith.constant 0 : i32
    %c0_i32_1 = arith.constant 0 : i32
    return %c0_i32, %c0_i32_0 : i32, i32
  }
  func.func @transform_2(%arg0: i32) -> (i32, i32) {
    %c0_i32 = arith.constant 0 : i32
    %c0_i32_0 = arith.constant 0 : i32
    %c0_i32_1 = arith.constant 0 : i32
    return %c0_i32, %c0_i32_0 : i32, i32
  }
  func.func @transform_3(%arg0: i32) -> (i32, i32) {
    %c0_i32 = arith.constant 0 : i32
    %c0_i32_0 = arith.constant 0 : i32
    %c0_i32_1 = arith.constant 0 : i32
    return %c0_i32, %c0_i32_0 : i32, i32
  }
  func.func @transform_4(%arg0: i32) -> (i32, i32) {
    %c0_i32 = arith.constant 0 : i32
    %c0_i32_0 = arith.constant 0 : i32
    %c0_i32_1 = arith.constant 0 : i32
    return %c0_i32, %c0_i32_0 : i32, i32
  }
  func.func @transform_5(%arg0: i32) -> (i32, i32) {
    %c0_i32 = arith.constant 0 : i32
    %c0_i32_0 = arith.constant 0 : i32
    return %arg0, %c0_i32 : i32, i32
  }
  func.func @transform_6(%arg0: i32) -> (i32, i32) {
    %c0_i32 = arith.constant 0 : i32
    %c0_i32_0 = arith.constant 0 : i32
    return %arg0, %c0_i32 : i32, i32
  }
  func.func @transform_7(%arg0: i32) -> (i32, i32) {
    %c0_i32 = arith.constant 0 : i32
    %c0_i32_0 = arith.constant 0 : i32
    return %arg0, %c0_i32 : i32, i32
  }
}

</mosaic_0001>

<bundles_post_ra>
// kernel: tpu_custom_call.1
= control target key start
LH: loop header
LB: loop body
LE: loop exit
PB: predicated region body
PF: predicated region fallthrough
CT: control target
= control target key end

     0   :  { %13 = vsyncpa [#allocation3], 0  ;;  %s1408_s0 = inlined_call_operand.hbm [shape: bf16[32,1024], index: 0, kind: input, shape index: {}]   ;;  %s1409_s1 = inlined_call_operand.hbm [shape: bf16[128,128], index: 1, kind: input, shape index: {}]   ;;  %s1410_s2 = inlined_call_operand.vmem [shape: f32[1,128], index: 2, kind: input, shape index: {}]   ;;  %s1411_s3 = inlined_call_operand.hbm [shape: bf16[128,128], index: 3, kind: input, shape index: {}]   ;;  %s1412_s4 = inlined_call_operand.vmem [shape: f32[1,128], index: 4, kind: input, shape index: {}]   ;;  %s1413_s5 = inlined_call_operand.vmem [shape: s32[32,1], index: 5, kind: input, shape index: {}]   ;;  %s1414_s6 = inlined_call_operand.vmem [shape: s32[32,1], index: 6, kind: output, shape index: {0}]   ;;  %s1415_s7 = inlined_call_operand.vmem [shape: f32[32,1], index: 7, kind: output, shape index: {1}]  }
   0x1   :  { %15 = vsyncpa [#allocation3 + $0x1], 0 }
   0x2   :  { %16 = vsyncpa [#allocation5], 0  ;;  %s1186_s24 = smov 0   ;;  %s1188_s25 = smov 0  }
   0x3   :  { %s1190_s26 = smov 0   ;;  %s1192_s27 = smov 0  }
   0x4 LB: > { %s1421_s28 = sadd.s32 4294967295, %s1135_s27   ;;  %s1206_s29 = sadd.s32 1, %s1135_s27   ;;  %s1135_s27 = sphi %s1192_s27, %s1440_s27   ;;  %s1131_s26 = sphi %s1190_s26, %s1439_s26   ;;  %s1127_s25 = sphi %s1188_s25, %s1438_s25   ;;  %s1123_s24 = sphi %s1186_s24, %s1437_s24  }
   0x5   : > { %s26_s30 = ssub.s32 %s1135_s27, %s1206_s29  ;;  %s29_s8 = sadd.s32 1, %s1131_s26 }
   0x6   : > { %p27_p0 = scmp.eq.s32.totalorder %s26_s30, 0  ;;  %p36_p1 = scmp.ne.s32.totalorder %s1131_s26, %s1127_s25 }
   0x7   : > { %p37_p2 = scmp.eq.s32.totalorder %s1135_s27, 0  ;;  %p42_p3 = scmp.ne.s32.totalorder %s1127_s25, %s1123_s24 }
   0x8   : > { %s1216_s9 = scalar_select %p27_p0, %s1131_s26, %s29_s8  }
   0x9   : > { %p1218_p4 = por %p37_p2, %p36_p1  ;;  %p1224_p5 = scmp.eq.s32.totalorder %s1421_s28, 0 }
   0xa   : > { %1422 = sst [smem:[#allocation9_spill]] %s1216_s9  ;;  %p815_p6 = scmp.ge.s32.totalorder %s1135_s27, 1 }
   0xb   : > { %s1424_s11 = scalar_select %p1224_p5, 1, 0 }
   0xc   : > { %p215_p7 = scmp.lt.s32.totalorder %s1135_s27, 3  ;;  %p1232_p8 = por %p1224_p5, %p42_p3 }
   0xd   : > { %s1137_s14 = smov [#allocation4]   ;;  %p937_p12 = scmp.lt.s32.totalorder %s1135_s27, 2 }
   0xe   : > { %s1425_s12 = scalar_select %p1232_p8, 1, 0 }
   0xf   : > { %p1236_p9 = pnand %p815_p6, %p215_p7  ;;  %s227_s15 = sshll.u32 %s1137_s14, 4  ;;  %s228_s15 = int_to_ptr.vmem [resolvable:$true] %s227_s15 }
  0x10   : > { %p1252_p13 = pnand %p937_p12, %p1218_p4  ;;  %s1011_s21 = scalar_lea.hbm %s1409_s1, 1024 }
  0x11   : > { %s1426_s13 = scalar_select %p1236_p9, 1, 0 }
  0x12   : > { %p924_p10 = pneg %p1236_p9  ;;  %p1012_p0 = scmp.ne.s32.totalorder %s1409_s1, %s1011_s21 }
  0x13   : > { %s1428_s18 = scalar_select %p1252_p13, 1, 0 }
  0x14   : > { %p1244_p11 = pnand %p924_p10, %p1224_p5  ;;  %p1018_p4 = scmp.lt.u32.totalorder %s1011_s21, %s1409_s1 }
  0x16   : > { %p1013_p1 = pneg %p1244_p11 }
  0x18   : > { %p1014_p2 = pnand %p1013_p1, %p1012_p0 }
  0x1a   : > { %p1015_p3 = pneg %p1014_p2 }
  0x1c   : > { %p1020_p6 = pnand %p1018_p4, %p1015_p3 }
  0x1e   : > { %1023 = shalt.err (!%p1020_p6)
}
  0x1f   : > { %s1024_s8 = scalar_lea.vmem %s228_s15, 1024  ;;  %p1032_p5 = scmp.lt.s32.totalorder %s228_s15, %s228_s15 }
  0x20   : > { %p1025_p7 = scmp.ne.s32.totalorder %s228_s15, %s1024_s8  ;;  %p1033_p8 = scmp.lt.s32.totalorder %s1024_s8, %s1024_s8 }
  0x22   : > { %p1027_p10 = pnand %p1025_p7, %p1013_p1  ;;  %p1034_p9 = por %p1033_p8, %p1032_p5 }
  0x24   : > { %p1028_p12 = pneg %p1027_p10 }
  0x26   : > { %p1035_p13 = pnand %p1034_p9, %p1028_p12 }
  0x28   : > { %1038 = shalt.err (!%p1035_p13)
}
  0x29   : > { %s1138_s10 = smov 64   ;;  %s1139_s14 = smov 4  }
  0x2a   : > { %927 = dma.hbm_to_vmem [thread:$0]  (!%p1244_p11), %s1409_s1, 1024, %s228_s15, [#allocation5], %s1138_s10, %s1138_s10, %s1139_s14  }
  0x2b   : > { %s1140_s21 = smov [#allocation6]   ;;  %s1039_s30 = scalar_lea.hbm %s1411_s3, 1024 }
  0x2c   : > { %s243_s22 = sshll.u32 %s1140_s21, 4  ;;  %p1040_p5 = scmp.ne.s32.totalorder %s1411_s3, %s1039_s30  ;;  %s244_s22 = int_to_ptr.vmem [resolvable:$true] %s243_s22 }
  0x2d   : > { %p1046_p13 = scmp.lt.u32.totalorder %s1039_s30, %s1411_s3 }
  0x2e   : > { %p1042_p8 = pnand %p1040_p5, %p1013_p1 }
  0x30   : > { %p1043_p9 = pneg %p1042_p8 }
  0x32   : > { %p1048_p0 = pnand %p1046_p13, %p1043_p9 }
  0x34   : > { %1051 = shalt.err (!%p1048_p0)
}
  0x35   : > { %s1052_s15 = scalar_lea.vmem %s244_s22, 1024  ;;  %p1060_p6 = scmp.lt.s32.totalorder %s244_s22, %s244_s22 }
  0x36   : > { %p1053_p2 = scmp.ne.s32.totalorder %s244_s22, %s1052_s15  ;;  %p1061_p7 = scmp.lt.s32.totalorder %s1052_s15, %s1052_s15 }
  0x38   : > { %p1055_p3 = pnand %p1053_p2, %p1013_p1  ;;  %p1062_p10 = por %p1061_p7, %p1060_p6 }
  0x3a   : > { %p1056_p4 = pneg %p1055_p3 }
  0x3c   : > { %p1063_p12 = pnand %p1062_p10, %p1056_p4 }
  0x3e   : > { %1066 = shalt.err (!%p1063_p12)
}
  0x3f   : > { %930 = dma.hbm_to_vmem [thread:$0]  (!%p1244_p11), %s1411_s3, 1024, %s244_s22, [#allocation5], %s1138_s10, %s1138_s10, %s1139_s14  }
  0x40   : > { %s1429_s17 = sand.u32 1, %s1131_s26   ;;  %s855_s20 = sshll.u32 %s1135_s27, 10 }
  0x41   : > { %s819_s19 = sshll.u32 %s1429_s17, 3  ;;  %s1310_s24 = scalar_lea.hbm %s1408_s0, %s855_s20 }
  0x42   : > { %s264_s16 = scalar_lea.vmem [#allocation2], %s819_s19  ;;  %s1430_s8 = smov %s1429_s17 }
  0x43   : > { %s272_s30 = sshll.u32 %s264_s16, 4  ;;  %s1316_s15 = scalar_lea.sflag [#allocation3], %s1430_s8  ;;  %s1312_s30 = int_to_ptr.vmem [resolvable:$true] %s272_s30 }
  0x44   : > { %s1067_s22 = scalar_lea.hbm %s1310_s24, 128  ;;  %p1431_p1 = scmp.ne.s32.totalorder %s1428_s18, 0 }
  0x45   : > { %p1068_p11 = scmp.ne.s32.totalorder %s1310_s24, %s1067_s22  ;;  %s1072_s17 = scalar_lea.hbm %s1408_s0, 2048 }
  0x46   : > { %p1069_p5 = pneg %p1431_p1  ;;  %p1073_p13 = scmp.lt.u32.totalorder %s1310_s24, %s1408_s0 }
  0x47   : > { %p1074_p0 = scmp.lt.u32.totalorder %s1072_s17, %s1067_s22  ;;  %p1076_p3 = scmp.lt.u32.totalorder %s1067_s22, %s1310_s24 }
  0x48   : > { %p1070_p8 = pnand %p1069_p5, %p1068_p11 }
  0x49   : > { %p1075_p2 = por %p1074_p0, %p1073_p13 }
  0x4a   : > { %p1071_p9 = pneg %p1070_p8 }
  0x4b   : > { %p1077_p4 = por %p1076_p3, %p1075_p2 }
  0x4d   : > { %p1078_p6 = pnand %p1077_p4, %p1071_p9 }
  0x4f   : > { %1081 = shalt.err (!%p1078_p6)
}
  0x50   : > { %s1082_s21 = scalar_lea.vmem %s1312_s30, 128  ;;  %s1141_s23 = smov [#allocation2]  }
  0x51   : > { %p1083_p7 = scmp.ne.s32.totalorder %s1312_s30, %s1082_s21  ;;  %s1087_s16 = sshll.u32 %s1141_s23, 4  ;;  %s1088_s16 = int_to_ptr.vmem [resolvable:$false] %s1087_s16 }
  0x52   : > { %s1089_s8 = scalar_lea.vmem %s1088_s16, 256  ;;  %p1090_p11 = scmp.lt.s32.totalorder %s1312_s30, %s1088_s16 }
  0x53   : > { %p1085_p10 = pnand %p1083_p7, %p1069_p5  ;;  %p1091_p8 = scmp.lt.s32.totalorder %s1089_s8, %s1082_s21 }
  0x55   : > { %p1086_p12 = pneg %p1085_p10  ;;  %p1092_p13 = por %p1091_p8, %p1090_p11 }
  0x57   : > { %p1093_p0 = pnand %p1092_p13, %p1086_p12 }
  0x59   : > { %1096 = shalt.err (!%p1093_p0)
}
  0x5a   : > { %s1142_s22 = smov 512   ;;  %p1432_p5 = scmp.ne.s32.totalorder %s1426_s13, 0 }
  0x5b   : > { %934 = dma.hbm_to_vmem [thread:$0]  (!%p1431_p1), %s1310_s24, 128, %s1312_s30, %s1316_s15, %s1142_s22, %s1138_s10, %s1139_s14  }
  0x5c   : > { %293 = sbr.rel (%p1432_p5) target bundleno = 1026 (0x402), region = 44  ;;  %s295_s28 = sand.u32 (!%p1432_p5), 1, %s1127_s25  }
  0x5d   : > { %s1349_s9 = sshll.u32 (!%p1432_p5), %s295_s28, 3  ;;  %s296_s17 = scalar_lea.sflag (!%p1432_p5), [#allocation3], %s295_s28 }
  0x5e   : > { %s299_s20 = scalar_lea.vmem (!%p1432_p5), [#allocation2], %s1349_s9  ;;  %p1433_p9 = scmp.ne.s32.totalorder (!%p1432_p5), %s1425_s12, 0 }
  0x63   : > { %1114 = dma.done.wait (%p1433_p9), %s296_s17, 128  }
  0x64   : > { %1116 = vsyncadd (%p1433_p9), %s296_s17, 4294967168  ;;  %p1434_p2 = scmp.ne.s32.totalorder %s1424_s11, 0 }
  0x66   : > { %1118 = dma.done.wait (%p1434_p2), [#allocation5], 2048  }
  0x67   : > { %1120 = vsyncadd (%p1434_p2), [#allocation5], 4294965248  ;;  %v1143_v0 = vmov 0.0   ;;  %vm1144_vm0 = vmmov 0   ;;  %v982_v1 = vld [vmem:[#allocation4] sm:$0xff]   ;;  %v983_v2 = vld [vmem:[#allocation4 + $0x8] sm:$0xff]   ;;  %v603_v29 = vlaneseq }
  0x68   : > { %874 = vmatprep.subr.bf16.mxu0 %v1143_v0  ;;  %890 = vmatprep.mubr.msk.bf16.mxu0 %vm1144_vm0, %v1143_v0  ;;  %v984_v3 = vld [vmem:[#allocation4 + $0x10] sm:$0xff]   ;;  %v991_v4 = vld [vmem:[#allocation6] sm:$0xff]   ;;  %v985_v5 = vld [vmem:[#allocation4 + $0x18] sm:$0xff]   ;;  %v1145_v28 = vmov 0   ;;  %s1435_s10 = sadd.s32 4294967295, %s1135_s27   ;;  %vm644_vm8 = vcmask 7168  }
  0x69   : > { %894 = vmatprep.subr.bf16.mxu1 %v1143_v0  ;;  %910 = vmatprep.mubr.msk.bf16.mxu1 %vm1144_vm0, %v1143_v0  ;;  %v992_v6 = vld [vmem:[#allocation6 + $0x8] sm:$0xff]   ;;  %v986_v7 = vld [vmem:[#allocation4 + $0x20] sm:$0xff]   ;;  %v993_v8 = vld [vmem:[#allocation6 + $0x10] sm:$0xff]   ;;  %v1365_v30 = vand.u32 127, %v603_v29  ;;  %s827_s14 = sshll.u32 %s1435_s10, 1 }
  0x6a   : > { %875 = vmatpush3.bf16.msra.mxu0 %v982_v1  ;;  %895 = vmatpush3.bf16.msra.mxu1 %v991_v4  ;;  %v987_v9 = vld [vmem:[#allocation4 + $0x28] sm:$0xff]   ;;  %v994_v10 = vld [vmem:[#allocation6 + $0x18] sm:$0xff]   ;;  %v988_v11 = vld [vmem:[#allocation4 + $0x30] sm:$0xff]   ;;  %p350_p1 = scmp.lt.s32.totalorder %s827_s14, 3 }
  0x6b   : > { %876 = vmatprep.subr.bf16.mxu0 %v1143_v0  ;;  %896 = vmatprep.subr.bf16.mxu1 %v1143_v0  ;;  %v989_v12 = vld [vmem:[#allocation4 + $0x38] sm:$0xff]   ;;  %v995_v14 = vld [vmem:[#allocation6 + $0x20] sm:$0xff]   ;;  %v996_v15 = vld [vmem:[#allocation6 + $0x28] sm:$0xff]   ;;  %vm605_vm1 = vcmp.lt.s32.totalorder %v1365_v30, 3 }
  0x6c   : > { %v990_v13 = vld [vmem:[%s299_s20] sm:$0xff]   ;;  %980 = vset.pattern.permute.xlu0 %v1145_v28  ;;  %981 = vset.pattern.permute.xlu1 %v1145_v28  ;;  %s1442_s14 = smov (!%p350_p1, %s827_s14), 3 }
  0x6d   : > { %v997_v16 = vld [vmem:[#allocation6 + $0x30] sm:$0xff]   ;;  %v998_v17 = vld [vmem:[#allocation6 + $0x38] sm:$0xff]   ;;  %s1373_s24 = sshll.u32 %s1442_s14, 3 }
  0x6e   : > { %877 = vmatpush3.bf16.msra.mxu0 %v983_v2  ;;  %897 = vmatpush3.bf16.msra.mxu1 %v992_v6  ;;  %v833_v18 = vld [vmem:[%s1410_s2] ss:$0 sm:$0xff]  ;;  %s353_s19 = scalar_lea.vmem %s1413_s5, %s1373_s24  ;;  %s365_s23 = scalar_lea.vmem %s1415_s7, %s1373_s24 }
  0x6f   : > { %878 = vmatprep.subr.bf16.mxu0 %v1143_v0  ;;  %898 = vmatprep.subr.bf16.mxu1 %v1143_v0  ;;  %v843_v31 = vld [vmem:[%s1412_s4] ss:$0 sm:$0xff]  ;;  %v662_v52 = vld [vmem:[%s353_s19 + $0x8] sm:$0xff]  ;;  %s359_s22 = scalar_lea.vmem %s1414_s6, %s1373_s24 }
  0x70   : > { %v661_v40 = vld [vmem:[%s353_s19] sm:$0xff] }
  0x72   : > { %879 = vmatpush3.bf16.msra.mxu0 %v984_v3  ;;  %899 = vmatpush3.bf16.msra.mxu1 %v993_v8 }
  0x73   : > { %880 = vmatprep.subr.bf16.mxu0 %v1143_v0  ;;  %900 = vmatprep.subr.bf16.mxu1 %v1143_v0 }
  0x76   : > { %881 = vmatpush3.bf16.msra.mxu0 %v985_v5  ;;  %901 = vmatpush3.bf16.msra.mxu1 %v994_v10 }
  0x77   : > { %882 = vmatprep.subr.bf16.mxu0 %v1143_v0  ;;  %902 = vmatprep.subr.bf16.mxu1 %v1143_v0 }
  0x7a   : > { %883 = vmatpush3.bf16.msra.mxu0 %v986_v7  ;;  %903 = vmatpush3.bf16.msra.mxu1 %v995_v14 }
  0x7b   : > { %884 = vmatprep.subr.bf16.mxu0 %v1143_v0  ;;  %904 = vmatprep.subr.bf16.mxu1 %v1143_v0 }
  0x7e   : > { %885 = vmatpush3.bf16.msra.mxu0 %v987_v9  ;;  %905 = vmatpush3.bf16.msra.mxu1 %v996_v15 }
  0x7f   : > { %886 = vmatprep.subr.bf16.mxu0 %v1143_v0  ;;  %906 = vmatprep.subr.bf16.mxu1 %v1143_v0 }
  0x82   : > { %887 = vmatpush3.bf16.msra.mxu0 %v988_v11  ;;  %907 = vmatpush3.bf16.msra.mxu1 %v997_v16 }
  0x83   : > { %888 = vmatprep.subr.bf16.mxu0 %v1143_v0  ;;  %908 = vmatprep.subr.bf16.mxu1 %v1143_v0 }
  0x86   : > { %889 = vmatpush3.bf16.msra.mxu0 %v989_v12  ;;  %909 = vmatpush3.bf16.msra.mxu1 %v998_v17 }
  0x89   : > { %891 = vmatmul.mubr.bf16.vlgmr.msra.gmra.mrb[0].mxu0 %v990_v13 }
 0x15c   : > { %v481_v19 = vpop.f32.mrb[0].mxu0 }
 0x15d   : > { %v482_v20 = vadd.f32 %v833_v18, %v481_v19  ;;  %v892_v21 = vpop.f32.mrb[1].mxu0 }
 0x15e   : > { %v484_v22 = vpop.f32.mrb[2].mxu0 }
 0x15f   : > { %v485_v23 = vadd.f32 %v833_v18, %v484_v22  ;;  %v893_v24 = vpop.f32.mrb[3].mxu0  ;;  %999 = vtanh.f32 %v482_v20 }
 0x161   : > { %1001 = vtanh.f32 %v485_v23 }
 0x169   : > { %v1000_v25 = vpop.eup %999 }
 0x16b   : > { %v1002_v26 = vpop.eup %1001 }
 0x16c   : > { %v490_v27 = vpack.c.bf16 %v1002_v26, %v1000_v25 }
 0x16e   : > { %911 = vmatmul.mubr.bf16.vlgmr.msra.gmra.mrb[0].mxu1 %v490_v27 }
 0x241   : > { %v596_v32 = vpop.f32.mrb[0].mxu1 }
 0x242   : > { %v597_v33 = vadd.f32 %v843_v31, %v596_v32  ;;  %v912_v34 = vpop.f32.mrb[1].mxu1 }
 0x243   : > { %v599_v35 = vpop.f32.mrb[2].mxu1 }
 0x244   : > { %v600_v36 = vadd.f32 %v843_v31, %v599_v35  ;;  %v913_v37 = vpop.f32.mrb[3].mxu1  ;;  %v606_v38 = vsel %vm605_vm1, %v597_v33, -1e+30 }
 0x245   : > { %608 = vmax.xlane.f32.xlu0 %v606_v38 }
 0x246   : > { %v607_v39 = vsel %vm605_vm1, %v600_v36, -1e+30 }
 0x249   : > { %610 = vmax.xlane.f32.xlu0 %v607_v39 }
 0x25f   : > { %664 = vperm.xlu0 %980, %v661_v40  }
 0x2d2   : > { %v609_v41 = vpop.xlane.xlu0 %608 }
 0x2d3   : > { %vm612_vm2 = vcmp.eq.f32.partialorder %v606_v38, %v609_v41  ;;  %v647_v53 = vsub.f32 %v606_v38, %v609_v41 }
 0x2d4   : > { %v614_v42 = vsel %vm612_vm2, %v1365_v30, 128 }
 0x2d5   : > { %v617_v43 = vshra.s32 %v614_v42, 16  ;;  %v649_v54 = vmul.f32 1.442695, %v647_v53  ;;  %v616_v58 = vand.u32 65535, %v614_v42 }
 0x2d6   : > { %v611_v44 = vpop.xlane.xlu0 %610 }
 0x2d7   : > { %vm613_vm3 = vcmp.eq.f32.partialorder %v607_v39, %v611_v44  ;;  %v648_v45 = vsub.f32 %v607_v39, %v611_v44  ;;  %v619_v46 = vcvt.s32.f32 %v617_v43  ;;  %v618_v60 = vcvt.s32.f32 %v616_v58 }
 0x2d8   : > { %v615_v47 = vsel %vm613_vm3, %v1365_v30, 128 }
 0x2d9   : > { %v651_v48 = vmul.f32 1.442695, %v648_v45  ;;  %620 = vmin.xlane.f32.xlu1 %v619_v46  ;;  %v631_v49 = vshra.s32 %v615_v47, 16  ;;  %v630_v61 = vand.u32 65535, %v615_v47 }
 0x2db   : > { %1003 = vpow2.f32 %v651_v48  ;;  %v633_v50 = vcvt.s32.f32 %v631_v49  ;;  %v632_v0 = vcvt.s32.f32 %v630_v61 }
 0x2dc   : > { %1005 = vpow2.f32 %v649_v54 }
 0x2dd   : > { %634 = vmin.xlane.f32.xlu1 %v633_v50 }
 0x2de   : > { %v665_v55 = vpop.permute.xlu0 %664 }
 0x2df   : > { %vm669_vm4 = vcmp.eq.s32.totalorder %v1365_v30, %v665_v55 }
 0x2e0   : > { %v671_v57 = vsel %vm669_vm4, %v647_v53, 0.0 }
 0x2e5   : > { %v1004_v51 = vpop.eup %1003 }
 0x2e6   : > { %655 = vadd.xlane.f32.xlu0 %v1004_v51  ;;  %v1006_v56 = vpop.eup %1005 }
 0x2ee   : > { %667 = vperm.xlu1 %981, %v662_v52  }
 0x312   : > { %653 = vadd.xlane.f32.xlu1 %v1006_v56 }
 0x316   : > { %673 = vadd.xlane.f32.xlu1 %v671_v57 }
 0x366   : > { %v621_v59 = vpop.xlane.xlu1 %620 }
 0x367   : > { %vm622_vm5 = vcmp.eq.f32.partialorder %v619_v46, %v621_v59  ;;  %v627_v10 = vcvt.f32.s32 %v621_v59 }
 0x368   : > { %v623_v62 = vsel %vm622_vm5, %v618_v60, inf }
 0x369   : > { %624 = vmin.xlane.f32.xlu1 %v623_v62  ;;  %v628_v12 = vshll.u32 %v627_v10, 16 }
 0x36a   : > { %v635_v63 = vpop.xlane.xlu1 %634 }
 0x36b   : > { %vm636_vm6 = vcmp.eq.f32.partialorder %v633_v50, %v635_v63  ;;  %v641_v13 = vcvt.f32.s32 %v635_v63 }
 0x36c   : > { %v637_v1 = vsel %vm636_vm6, %v632_v0, inf }
 0x36d   : > { %638 = vmin.xlane.f32.xlu1 %v637_v1  ;;  %v642_v18 = vshll.u32 %v641_v13, 16 }
 0x36e   : > { %v668_v2 = vpop.permute.xlu1 %667 }
 0x36f   : > { %vm670_vm7 = vcmp.eq.s32.totalorder %v1365_v30, %v668_v2 }
 0x370   : > { %v672_v3 = vsel %vm670_vm7, %v648_v45, 0.0 }
 0x371   : > { %675 = vadd.xlane.f32.xlu1 %v672_v3 }
 0x373   : > { %v656_v9 = vpop.xlane.xlu0 %655 }
 0x39f   : > { %v654_v4 = vpop.xlane.xlu1 %653 }
 0x3a0   : > { %1007 = vlog2.f32 %v654_v4 }
 0x3a1   : > { %1009 = vlog2.f32 %v656_v9 }
 0x3a3   : > { %v674_v7 = vpop.xlane.xlu1 %673 }
 0x3aa   : > { %v1008_v5 = vpop.eup %1007 }
 0x3ab   : > { %v658_v6 = vmul.f32 0.6931472, %v1008_v5  ;;  %v1010_v16 = vpop.eup %1009 }
 0x3ac   : > { %v660_v21 = vmul.f32 0.6931472, %v1010_v16 }
 0x3ad   : > { %v677_v8 = vsub.f32 %v658_v6, %v674_v7 }
 0x3af   : > { %679 = vst.msk [vmem:[%s365_s23] sm:$0xff] %vm644_vm8, %v677_v8 }
 0x3f6   : > { %v625_v11 = vpop.xlane.xlu1 %624 }
 0x3f7   : > { %v626_v14 = vcvt.f32.s32 %v625_v11 }
 0x3f9   : > { %v629_v15 = vadd.s32 %v628_v12, %v626_v14 }
 0x3fa   : > { %v639_v17 = vpop.xlane.xlu1 %638 }
 0x3fb   : > { %645 = vst.msk [vmem:[%s359_s22] sm:$0xff] %vm644_vm8, %v629_v15  ;;  %v640_v19 = vcvt.f32.s32 %v639_v17 }
 0x3fd   : > { %v643_v20 = vadd.s32 %v642_v18, %v640_v19 }
 0x3fe   : > { %v676_v22 = vpop.xlane.xlu1 %675 }
 0x3ff   : > { %646 = vst.msk [vmem:[%s359_s22 + $0x8] sm:$0xff] %vm644_vm8, %v643_v20  ;;  %v678_v23 = vsub.f32 %v660_v21, %v676_v22 }
 0x401   : > { %680 = vst.msk [vmem:[%s365_s23 + $0x8] sm:$0xff] %vm644_vm8, %v678_v23 }
 0x402 PF: > { %s1436_s28 = sld [smem:[#allocation9_spill]]  ;;  %p19_p3 = scmp.ge.s32.totalorder %s1206_s29, 4  }
 0x403   : > { %s1437_s24 = smov %s1127_s25  ;;  %s1438_s25 = smov %s1131_s26 }
 0x404   : > { %s1440_s27 = smov %s1206_s29  ;;  %21 = sbr.rel (!%p19_p3) target bundleno = 4 (0x4), region = 107 }
 0x408   : > { %s1439_s26 = smov %s1436_s28 }
 0x40b   :  { %720 = vsyncpa [#allocation3], 1 }
 0x40c   :  { %722 = vsyncpa [#allocation3 + $0x1], 1 }
 0x40d   :  { %723 = vsyncpa [#allocation5], 1 }

</bundles_post_ra>
